<compile_context>
chip_gen: v7x
topology: tpu7x:2x2x1
jax: 0.10.0
libtpu: 0.0.40
codegen_flags: <defaults>
</compile_context>

<pallas_src>
import math
import functools

import jax
import jax.numpy as jnp
from jax import lax
from jax.experimental import pallas as pl
from jax.experimental.pallas import tpu as pltpu


# ----------------------------- VMEM budgeting ---------------------------------

def _vmem_capacity_bytes():
    """Per-core VMEM capacity (generation-aware; 64 MiB v7x, 128 MiB v5e/v6e)."""
    cap = 128 << 20
    try:
        info = pltpu.get_tpu_info()
        for attr in ("vmem_capacity_bytes", "vmem_bytes"):
            v = getattr(info, attr, None)
            if v:
                cap = int(v)
                break
    except Exception:
        pass
    return cap


def _vmem_budget_bytes():
    return _vmem_capacity_bytes() - (16 << 20)          # headroom for Mosaic internals


def _vmem_request(needed_bytes):
    budget = _vmem_budget_bytes()
    return int(min(budget, max(2 * needed_bytes, 64 << 20)))


def _pick_k_tile(l_k, per_row_bytes, fixed_bytes, budget_bytes, cap_rows=4096):
    """Largest L_K tile fitting the VMEM budget: full extent when it fits,
    else the largest /128 divisor of L_K within budget (full extent fallback)."""
    avail = max(budget_bytes - fixed_bytes, 0)
    t_max = min(cap_rows, max(avail // max(per_row_bytes, 1), 128))
    if l_k <= t_max:
        return l_k
    t = (t_max // 128) * 128
    while t >= 128:
        if l_k % t == 0:
            return t
        t -= 128
    return l_k  # no /128 divisor fits -- rare; legal (block == full extent)


# ----------------------------- kernels -----------------------------------------

def _score_kernel(q_ref, k_ref, cnt_ref, m_ref, max_sc, sum_sc, *, heads, d, inv_l_k):
    """M = max_s(Q.K_sample) - sum_s(Q.K_sample)/L_K over sampled keys.

    Grid (batch, L_K tile); running max / counted sum live in f32 scratch so the
    [L_Q, L_K] score matrix never has to be resident.  The sampled sum is taken
    straight from the score tile (cnt * s, VPU) -- no second MXU matmul.  Heads
    are sliced on the lane axis of the [L_Q|tk, H*D] blocks."""
    kb = pl.program_id(1)

    @pl.when(kb == 0)
    def _():
        max_sc[...] = jnp.full_like(max_sc, -jnp.inf)
        sum_sc[...] = jnp.zeros_like(sum_sc)

    cnt = cnt_ref[...].astype(jnp.float32)                  # [L_Q, tk] (from int8)
    sampled = cnt > 0.0
    for h in range(heads):                                  # static unroll (see TODO)
        q = q_ref[0, :, h * d:(h + 1) * d]                  # [L_Q, D]
        k = k_ref[0, :, h * d:(h + 1) * d]                  # [tk,  D]
        s = lax.dot_general(q, k, (((1,), (1,)), ((), ())),
                            preferred_element_type=jnp.float32)        # [L_Q, tk]
        blk_max = jnp.max(jnp.where(sampled, s, -jnp.inf), axis=-1)    # [L_Q]
        blk_sum = jnp.sum(cnt * s, axis=-1)                            # [L_Q]
        max_sc[h] = jnp.maximum(max_sc[h], blk_max)
        sum_sc[h] = sum_sc[h] + blk_sum

    @pl.when(kb == pl.num_programs(1) - 1)
    def _():
        m_ref[0] = max_sc[...] - sum_sc[...] * inv_l_k      # lane-dense [H, L_Q]


def _attn_kernel(qr_ref, k_ref, v_ref, o_ref, m_sc, l_sc, acc_sc, *, heads, d, scale):
    """Flash-style softmax(scale * Q_reduce K^T) V over L_K tiles for all heads
    of one batch.  Per-head running max/denominator/accumulator live in f32
    VMEM scratch; the output store is a single lane-dense [u, H*D] block."""
    kb = pl.program_id(1)

    @pl.when(kb == 0)
    def _():
        m_sc[...] = jnp.full_like(m_sc, -jnp.inf)
        l_sc[...] = jnp.zeros_like(l_sc)
        acc_sc[...] = jnp.zeros_like(acc_sc)

    for h in range(heads):                                  # static unroll (see TODO)
        q = qr_ref[0, :, h * d:(h + 1) * d]                 # [u,  D]
        k = k_ref[0, :, h * d:(h + 1) * d]                  # [tk, D]
        v = v_ref[0, :, h * d:(h + 1) * d]                  # [tk, D]
        s = lax.dot_general(q, k, (((1,), (1,)), ((), ())),
                            preferred_element_type=jnp.float32) * scale   # [u, tk]
        m_prev = m_sc[h]                                                  # [u, 1]
        m_new = jnp.maximum(m_prev, jnp.max(s, axis=-1, keepdims=True))
        alpha = jnp.exp(m_prev - m_new)
        p = jnp.exp(s - m_new)
        l_sc[h] = alpha * l_sc[h] + jnp.sum(p, axis=-1, keepdims=True)
        acc_sc[h] = alpha * acc_sc[h] + jnp.dot(
            p.astype(v.dtype), v, preferred_element_type=jnp.float32)     # [u, D]
        m_sc[h] = m_new

    @pl.when(kb == pl.num_programs(1) - 1)
    def _():
        for h in range(heads):
            # exact f32 divide (once per batch) -- parity over approx reciprocal
            o_ref[0, :, h * d:(h + 1) * d] = (acc_sc[h] / l_sc[h]).astype(o_ref.dtype)


# ----------------------------- pallas_call wrappers ----------------------------

def _score_pallas(qflat, kflat, counts, heads, d):
    b, l_q, hd = qflat.shape
    _, l_k, _ = kflat.shape
    itm = jnp.dtype(qflat.dtype).itemsize
    cnt_itm = jnp.dtype(counts.dtype).itemsize
    budget = _vmem_budget_bytes()
    # resident Q block (2 bufs) + output block (2 bufs) + 2 f32 scratch arrays
    fixed = 2 * l_q * hd * itm + 2 * heads * l_q * 4 + 2 * heads * l_q * 4
    # streamed per key row: K tile + counts tile (double-buffered) + f32 score transient
    per_row = 2 * (hd * itm + l_q * cnt_itm) + l_q * 4
    tk = _pick_k_tile(l_k, per_row, fixed, budget)
    vlim = _vmem_request(fixed + tk * per_row + (8 << 20))
    kernel = functools.partial(_score_kernel, heads=heads, d=d, inv_l_k=1.0 / l_k)
    return pl.pallas_call(
        kernel,
        out_shape=jax.ShapeDtypeStruct((b, heads, l_q), jnp.float32),
        grid=(b, l_k // tk),
        in_specs=[
            pl.BlockSpec((1, l_q, hd), lambda i, j: (i, 0, 0)),   # Q (resident per batch)
            pl.BlockSpec((1, tk, hd), lambda i, j: (i, j, 0)),    # K tile (streamed)
            pl.BlockSpec((l_q, tk), lambda i, j: (0, j)),         # counts tile (streamed)
        ],
        out_specs=pl.BlockSpec((1, heads, l_q), lambda i, j: (i, 0, 0)),
        scratch_shapes=[pltpu.VMEM((heads, l_q), jnp.float32),
                        pltpu.VMEM((heads, l_q), jnp.float32)],
        compiler_params=pltpu.CompilerParams(
            dimension_semantics=("parallel", "arbitrary"),
            vmem_limit_bytes=vlim),
    )(qflat, kflat, counts)


def _attn_pallas(qrf, kflat, vflat, scale, heads, d):
    b, u, hd = qrf.shape
    _, l_k, _ = kflat.shape
    itm = jnp.dtype(kflat.dtype).itemsize
    q_itm = jnp.dtype(qrf.dtype).itemsize
    budget = _vmem_budget_bytes()
    # resident Q_reduce block + output block (2 bufs each) + f32 scratch
    fixed = 2 * u * hd * q_itm + 2 * u * hd * q_itm + (2 * heads * u + heads * u * d) * 4
    # streamed per key row: K + V tiles (double-buffered) + f32 score transient
    per_row = 2 * 2 * hd * itm + u * 4
    tk = _pick_k_tile(l_k, per_row, fixed, budget)
    vlim = _vmem_request(fixed + tk * per_row + (8 << 20))
    kernel = functools.partial(_attn_kernel, heads=heads, d=d, scale=scale)
    return pl.pallas_call(
        kernel,
        out_shape=jax.ShapeDtypeStruct((b, u, hd), qrf.dtype),
        grid=(b, l_k // tk),
        in_specs=[
            pl.BlockSpec((1, u, hd), lambda i, j: (i, 0, 0)),     # Q_reduce (resident)
            pl.BlockSpec((1, tk, hd), lambda i, j: (i, j, 0)),    # K tile (streamed)
            pl.BlockSpec((1, tk, hd), lambda i, j: (i, j, 0)),    # V tile (streamed)
        ],
        out_specs=pl.BlockSpec((1, u, hd), lambda i, j: (i, 0, 0)),
        scratch_shapes=[pltpu.VMEM((heads, u, 1), jnp.float32),    # running max
                        pltpu.VMEM((heads, u, 1), jnp.float32),    # running denom
                        pltpu.VMEM((heads, u, d), jnp.float32)],   # f32 accumulator
        compiler_params=pltpu.CompilerParams(
            dimension_semantics=("parallel", "arbitrary"),
            vmem_limit_bytes=vlim),
    )(qrf, kflat, vflat)


# ----------------------------- public forward ----------------------------------

def prob_attention(queries, keys, values, attn_mask=None, *, factor=5, scale=None,
                   mask_flag=True, sample_key=None, return_aux=False):
    """ProbAttention.forward (eval mode: nn.Dropout is identity)."""
    del attn_mask  # not consumed by the reference module's forward
    if sample_key is None:
        sample_key = jax.random.PRNGKey(0)
    B, L_Q, H, D = queries.shape
    _, L_K, _, _ = keys.shape

    U_part = min(int(factor * math.ceil(math.log(L_K))), L_K)
    u = min(int(factor * math.ceil(math.log(L_Q))), L_Q)

    if mask_flag:
        assert L_Q == L_K  # mirrors the assert inside _get_initial_context

    # Free reshapes only -- heads stay packed on the lane axis (no HBM transpose).
    qflat = queries.reshape(B, L_Q, H * D)
    kflat = keys.reshape(B, L_K, H * D)
    vflat = values.reshape(B, L_K, H * D)

    # torch.randint(L_K, (L_Q, sample_k)) equivalent (deterministic key).
    idx = jax.random.randint(sample_key, (L_Q, U_part), 0, L_K)
    # counts[i, j] = multiplicity of key j among query i's samples (int8 stream).
    rows = jnp.arange(L_Q, dtype=idx.dtype)[:, None]
    cnt_dtype = jnp.int8 if U_part <= 127 else jnp.int32
    counts = jnp.zeros((L_Q, L_K), jnp.int32).at[rows, idx].add(1).astype(cnt_dtype)

    # Kernel 1: sampled sparsity scores M, lane-dense [B, H, L_Q].
    M = _score_pallas(qflat, kflat, counts, H, D)
    # top-k selection (torch uses topk(sorted=False); ordering unspecified).
    M_top = jax.lax.top_k(M, u)[1]                                  # [B, H, u]

    # Gather the selected queries (tiny [B, u, H, D] intermediate, done in XLA).
    idx_t = jnp.transpose(M_top, (0, 2, 1))                         # [B, u, H]
    q_red = jnp.take_along_axis(queries, idx_t[..., None], axis=1)  # [B, u, H, D]
    qrf = q_red.reshape(B, u, H * D)

    scl = scale if scale is not None else 1.0 / math.sqrt(D)
    # Kernel 2: flash-tiled softmax attention, lane-dense [B, u, H*D].
    out = _attn_pallas(qrf, kflat, vflat, scl, H, D)
    context_in = out.reshape(B, u, H, D)
    if return_aux:
        return context_in, {"M": M, "M_top": M_top, "idx": idx}
    return context_in


# ----------------------- pure-JAX references (for checking) --------------------

def _reference_M(qh, kh, idx, L_K):
    # qh, kh: [B, H, L, D]; idx: [L_Q, sample_k]
    k_samp = kh[:, :, idx, :]                                       # [B,H,L_Q,s,D]
    qk = jnp.einsum('bhqd,bhqsd->bhqs', qh, k_samp)
    return qk.max(-1) - qk.sum(-1) / L_K


def _reference_out(queries, keys, values, M_top, scale=None):
    B, L_Q, H, D = queries.shape
    q = jnp.transpose(queries, (0, 2, 1, 3)).astype(jnp.float32)
    k = jnp.transpose(keys, (0, 2, 1, 3)).astype(jnp.float32)
    v = jnp.transpose(values, (0, 2, 1, 3)).astype(jnp.float32)
    q_red = jnp.take_along_axis(q, M_top[..., None], axis=2)
    s = jnp.einsum('bhud,bhkd->bhuk', q_red, k)
    scl = scale if scale is not None else 1.0 / math.sqrt(D)
    p = jax.nn.softmax(s * scl, axis=-1)
    o = jnp.einsum('bhuk,bhkd->bhud', p, v)
    return jnp.transpose(o, (0, 2, 1, 3))


if __name__ == "__main__":
    key = jax.random.PRNGKey(0)
    kq, kk, kv, ks = jax.random.split(key, 4)
    B, L, H, D = 2, 32, 4, 16                     # L_Q = L_K = 32 (mask_flag=True)
    queries = jax.random.normal(kq, (B, L, H, D), dtype=jnp.float32)
    keys_ = jax.random.normal(kk, (B, L, H, D), dtype=jnp.float32)
    values = jax.random.normal(kv, (B, L, H, D), dtype=jnp.float32)

    out, aux = prob_attention(queries, keys_, values, None,
                              sample_key=ks, return_aux=True)
    out = jax.block_until_ready(out)

    u_expected = min(5 * int(math.ceil(math.log(L))), L)            # 20
    assert out.shape == (B, u_expected, H, D), out.shape

    # check kernel 1 (sampled sparsity scores) against a pure-JAX gather reference
    qh = jnp.transpose(queries, (0, 2, 1, 3))
    kh = jnp.transpose(keys_, (0, 2, 1, 3))
    M_ref = _reference_M(qh, kh, aux["idx"], L)
    assert jnp.allclose(aux["M"], M_ref, atol=1e-3, rtol=1e-3), "score kernel mismatch"

    # check kernel 2 (online-softmax attention) with the same selected indices
    ref = _reference_out(queries, keys_, values, aux["M_top"])
    assert jnp.allclose(out, ref, atol=1e-2, rtol=1e-2), "attention kernel mismatch"

    # bf16 end-to-end smoke test (operands stay bf16, accumulation in f32)
    out_bf16 = prob_attention(queries.astype(jnp.bfloat16),
                              keys_.astype(jnp.bfloat16),
                              values.astype(jnp.bfloat16), None, sample_key=ks)
    out_bf16 = jax.block_until_ready(out_bf16)
    assert out_bf16.shape == (B, u_expected, H, D)
    assert out_bf16.dtype == jnp.bfloat16
    assert bool(jnp.all(jnp.isfinite(out_bf16.astype(jnp.float32))))

    print("KERNEL_OK")
</pallas_src>

<mosaic_0001>
module attributes {stable_mosaic.version = 11 : i64} {
  func.func @_score_kernel(%arg0: i32, %arg1: i32, %arg2: memref<1x32x64xf32, #tpu.memory_space<vmem>>, %arg3: memref<1x32x64xf32, #tpu.memory_space<vmem>>, %arg4: memref<32x32xi8, #tpu.memory_space<vmem>>, %arg5: memref<1x4x32xf32, #tpu.memory_space<vmem>>, %arg6: memref<4x32xf32, #tpu.memory_space<vmem>>, %arg7: memref<4x32xf32, #tpu.memory_space<vmem>>) attributes {dimension_semantics = [#tpu.dimension_semantics<parallel>, #tpu.dimension_semantics<arbitrary>], iteration_bounds = array<i64: 2, 1>, scalar_prefetch = 0 : i64, scratch_operands = 2 : i64, tpu.core_type = #tpu.core_type<tc>, window_params = [{transform_indices = @transform_0, window_bounds = array<i64: 1, 32, 64>}, {transform_indices = @transform_1, window_bounds = array<i64: 1, 32, 64>}, {transform_indices = @transform_2, window_bounds = array<i64: 32, 32>}, {transform_indices = @transform_3, window_bounds = array<i64: 1, 4, 32>}]} {
    %c0_i32 = arith.constant 0 : i32
    %0 = arith.cmpi eq, %arg1, %c0_i32 : i32
    %1 = arith.extui %0 : i1 to i32
    %c0_i32_0 = arith.constant 0 : i32
    %2 = arith.cmpi ne, %1, %c0_i32_0 : i32
    scf.if %2 {
      %cst_70 = arith.constant 0xFF800000 : f32
      %98 = vector.broadcast %cst_70 : f32 to vector<4x32xf32>
      %c0_71 = arith.constant 0 : index
      %c0_72 = arith.constant 0 : index
      %99 = vector.load %arg6[%c0_71, %c0_72] : memref<4x32xf32, #tpu.memory_space<vmem>>, vector<4x32xf32>
      tpu.vector_store %arg6[%c0_71, %c0_72], %98 {strides = array<i32>} : memref<4x32xf32, #tpu.memory_space<vmem>>, vector<4x32xf32>,
      %cst_73 = arith.constant 0.000000e+00 : f32
      %100 = vector.broadcast %cst_73 : f32 to vector<4x32xf32>
      %c0_74 = arith.constant 0 : index
      %c0_75 = arith.constant 0 : index
      %101 = vector.load %arg7[%c0_74, %c0_75] : memref<4x32xf32, #tpu.memory_space<vmem>>, vector<4x32xf32>
      tpu.vector_store %arg7[%c0_74, %c0_75], %100 {strides = array<i32>} : memref<4x32xf32, #tpu.memory_space<vmem>>, vector<4x32xf32>,
    } else {
    }
    %c0 = arith.constant 0 : index
    %c0_1 = arith.constant 0 : index
    %3 = vector.load %arg4[%c0, %c0_1] : memref<32x32xi8, #tpu.memory_space<vmem>>, vector<32x32xi8>
    %4 = arith.sitofp %3 : vector<32x32xi8> to vector<32x32xf32>
    %cst = arith.constant 0.000000e+00 : f32
    %5 = vector.broadcast %cst : f32 to vector<32x32xf32>
    %6 = arith.cmpf ogt, %4, %5 : vector<32x32xf32>
    %c0_2 = arith.constant 0 : index
    %c0_3 = arith.constant 0 : index
    %c0_4 = arith.constant 0 : index
    %7 = vector.load %arg2[%c0_2, %c0_3, %c0_4] : memref<1x32x64xf32, #tpu.memory_space<vmem>>, vector<1x32x16xf32>
    %8 = vector.shape_cast %7 : vector<1x32x16xf32> to vector<32x16xf32>
    %c0_5 = arith.constant 0 : index
    %c0_6 = arith.constant 0 : index
    %c0_7 = arith.constant 0 : index
    %9 = vector.load %arg3[%c0_5, %c0_6, %c0_7] : memref<1x32x64xf32, #tpu.memory_space<vmem>>, vector<1x32x16xf32>
    %10 = vector.shape_cast %9 : vector<1x32x16xf32> to vector<32x16xf32>
    %cst_8 = arith.constant dense<0.000000e+00> : vector<32x32xf32>
    %11 = tpu.matmul %8, %10, %cst_8 {dimension_numbers = #tpu.dot_dimension_numbers<[1], [1], [0], [0], [0, 0, 1, 0], [], []>} : vector<32x16xf32>, vector<32x16xf32>, vector<32x32xf32> -> vector<32x32xf32>
    %cst_9 = arith.constant 0xFF800000 : f32
    %12 = vector.broadcast %cst_9 : f32 to vector<32x32xf32>
    %13 = arith.select %6, %11, %12 : vector<32x32xi1>, vector<32x32xf32>
    %cst_10 = arith.constant dense<0xFF800000> : vector<32xf32>
    %14 = vector.multi_reduction <maximumf>, %13, %cst_10 [1] : vector<32x32xf32> to vector<32xf32>
    %15 = arith.mulf %4, %11 : vector<32x32xf32>
    %cst_11 = arith.constant dense<0.000000e+00> : vector<32xf32>
    %16 = vector.multi_reduction <add>, %15, %cst_11 [1] : vector<32x32xf32> to vector<32xf32>
    %c0_12 = arith.constant 0 : index
    %c0_13 = arith.constant 0 : index
    %17 = vector.load %arg6[%c0_12, %c0_13] : memref<4x32xf32, #tpu.memory_space<vmem>>, vector<1x32xf32>
    %18 = vector.shape_cast %17 : vector<1x32xf32> to vector<32xf32>
    %19 = arith.maximumf %18, %14 : vector<32xf32>
    %c0_14 = arith.constant 0 : index
    %c0_15 = arith.constant 0 : index
    %20 = vector.load %arg6[%c0_14, %c0_15] : memref<4x32xf32, #tpu.memory_space<vmem>>, vector<1x32xf32>
    %21 = vector.shape_cast %20 : vector<1x32xf32> to vector<32xf32>
    %22 = vector.shape_cast %19 : vector<32xf32> to vector<1x32xf32>
    tpu.vector_store %arg6[%c0_14, %c0_15], %22 {strides = array<i32>} : memref<4x32xf32, #tpu.memory_space<vmem>>, vector<1x32xf32>,
    %c0_16 = arith.constant 0 : index
    %c0_17 = arith.constant 0 : index
    %23 = vector.load %arg7[%c0_16, %c0_17] : memref<4x32xf32, #tpu.memory_space<vmem>>, vector<1x32xf32>
    %24 = vector.shape_cast %23 : vector<1x32xf32> to vector<32xf32>
    %25 = arith.addf %24, %16 : vector<32xf32>
    %c0_18 = arith.constant 0 : index
    %c0_19 = arith.constant 0 : index
    %26 = vector.load %arg7[%c0_18, %c0_19] : memref<4x32xf32, #tpu.memory_space<vmem>>, vector<1x32xf32>
    %27 = vector.shape_cast %26 : vector<1x32xf32> to vector<32xf32>
    %28 = vector.shape_cast %25 : vector<32xf32> to vector<1x32xf32>
    tpu.vector_store %arg7[%c0_18, %c0_19], %28 {strides = array<i32>} : memref<4x32xf32, #tpu.memory_space<vmem>>, vector<1x32xf32>,
    %c0_20 = arith.constant 0 : index
    %c0_21 = arith.constant 0 : index
    %c16 = arith.constant 16 : index
    %29 = vector.load %arg2[%c0_20, %c0_21, %c16] : memref<1x32x64xf32, #tpu.memory_space<vmem>>, vector<1x32x16xf32>
    %30 = vector.shape_cast %29 : vector<1x32x16xf32> to vector<32x16xf32>
    %c0_22 = arith.constant 0 : index
    %c0_23 = arith.constant 0 : index
    %c16_24 = arith.constant 16 : index
    %31 = vector.load %arg3[%c0_22, %c0_23, %c16_24] : memref<1x32x64xf32, #tpu.memory_space<vmem>>, vector<1x32x16xf32>
    %32 = vector.shape_cast %31 : vector<1x32x16xf32> to vector<32x16xf32>
    %cst_25 = arith.constant dense<0.000000e+00> : vector<32x32xf32>
    %33 = tpu.matmul %30, %32, %cst_25 {dimension_numbers = #tpu.dot_dimension_numbers<[1], [1], [0], [0], [0, 0, 1, 0], [], []>} : vector<32x16xf32>, vector<32x16xf32>, vector<32x32xf32> -> vector<32x32xf32>
    %cst_26 = arith.constant 0xFF800000 : f32
    %34 = vector.broadcast %cst_26 : f32 to vector<32x32xf32>
    %35 = arith.select %6, %33, %34 : vector<32x32xi1>, vector<32x32xf32>
    %cst_27 = arith.constant dense<0xFF800000> : vector<32xf32>
    %36 = vector.multi_reduction <maximumf>, %35, %cst_27 [1] : vector<32x32xf32> to vector<32xf32>
    %37 = arith.mulf %4, %33 : vector<32x32xf32>
    %cst_28 = arith.constant dense<0.000000e+00> : vector<32xf32>
    %38 = vector.multi_reduction <add>, %37, %cst_28 [1] : vector<32x32xf32> to vector<32xf32>
    %c1 = arith.constant 1 : index
    %c0_29 = arith.constant 0 : index
    %39 = vector.load %arg6[%c1, %c0_29] : memref<4x32xf32, #tpu.memory_space<vmem>>, vector<1x32xf32>
    %40 = vector.shape_cast %39 : vector<1x32xf32> to vector<32xf32>
    %41 = arith.maximumf %40, %36 : vector<32xf32>
    %c1_30 = arith.constant 1 : index
    %c0_31 = arith.constant 0 : index
    %42 = vector.load %arg6[%c1_30, %c0_31] : memref<4x32xf32, #tpu.memory_space<vmem>>, vector<1x32xf32>
    %43 = vector.shape_cast %42 : vector<1x32xf32> to vector<32xf32>
    %44 = vector.shape_cast %41 : vector<32xf32> to vector<1x32xf32>
    tpu.vector_store %arg6[%c1_30, %c0_31], %44 {strides = array<i32>} : memref<4x32xf32, #tpu.memory_space<vmem>>, vector<1x32xf32>,
    %c1_32 = arith.constant 1 : index
    %c0_33 = arith.constant 0 : index
    %45 = vector.load %arg7[%c1_32, %c0_33] : memref<4x32xf32, #tpu.memory_space<vmem>>, vector<1x32xf32>
    %46 = vector.shape_cast %45 : vector<1x32xf32> to vector<32xf32>
    %47 = arith.addf %46, %38 : vector<32xf32>
    %c1_34 = arith.constant 1 : index
    %c0_35 = arith.constant 0 : index
    %48 = vector.load %arg7[%c1_34, %c0_35] : memref<4x32xf32, #tpu.memory_space<vmem>>, vector<1x32xf32>
    %49 = vector.shape_cast %48 : vector<1x32xf32> to vector<32xf32>
    %50 = vector.shape_cast %47 : vector<32xf32> to vector<1x32xf32>
    tpu.vector_store %arg7[%c1_34, %c0_35], %50 {strides = array<i32>} : memref<4x32xf32, #tpu.memory_space<vmem>>, vector<1x32xf32>,
    %c0_36 = arith.constant 0 : index
    %c0_37 = arith.constant 0 : index
    %c32 = arith.constant 32 : index
    %51 = vector.load %arg2[%c0_36, %c0_37, %c32] : memref<1x32x64xf32, #tpu.memory_space<vmem>>, vector<1x32x16xf32>
    %52 = vector.shape_cast %51 : vector<1x32x16xf32> to vector<32x16xf32>
    %c0_38 = arith.constant 0 : index
    %c0_39 = arith.constant 0 : index
    %c32_40 = arith.constant 32 : index
    %53 = vector.load %arg3[%c0_38, %c0_39, %c32_40] : memref<1x32x64xf32, #tpu.memory_space<vmem>>, vector<1x32x16xf32>
    %54 = vector.shape_cast %53 : vector<1x32x16xf32> to vector<32x16xf32>
    %cst_41 = arith.constant dense<0.000000e+00> : vector<32x32xf32>
    %55 = tpu.matmul %52, %54, %cst_41 {dimension_numbers = #tpu.dot_dimension_numbers<[1], [1], [0], [0], [0, 0, 1, 0], [], []>} : vector<32x16xf32>, vector<32x16xf32>, vector<32x32xf32> -> vector<32x32xf32>
    %cst_42 = arith.constant 0xFF800000 : f32
    %56 = vector.broadcast %cst_42 : f32 to vector<32x32xf32>
    %57 = arith.select %6, %55, %56 : vector<32x32xi1>, vector<32x32xf32>
    %cst_43 = arith.constant dense<0xFF800000> : vector<32xf32>
    %58 = vector.multi_reduction <maximumf>, %57, %cst_43 [1] : vector<32x32xf32> to vector<32xf32>
    %59 = arith.mulf %4, %55 : vector<32x32xf32>
    %cst_44 = arith.constant dense<0.000000e+00> : vector<32xf32>
    %60 = vector.multi_reduction <add>, %59, %cst_44 [1] : vector<32x32xf32> to vector<32xf32>
    %c2 = arith.constant 2 : index
    %c0_45 = arith.constant 0 : index
    %61 = vector.load %arg6[%c2, %c0_45] : memref<4x32xf32, #tpu.memory_space<vmem>>, vector<1x32xf32>
    %62 = vector.shape_cast %61 : vector<1x32xf32> to vector<32xf32>
    %63 = arith.maximumf %62, %58 : vector<32xf32>
    %c2_46 = arith.constant 2 : index
    %c0_47 = arith.constant 0 : index
    %64 = vector.load %arg6[%c2_46, %c0_47] : memref<4x32xf32, #tpu.memory_space<vmem>>, vector<1x32xf32>
    %65 = vector.shape_cast %64 : vector<1x32xf32> to vector<32xf32>
    %66 = vector.shape_cast %63 : vector<32xf32> to vector<1x32xf32>
    tpu.vector_store %arg6[%c2_46, %c0_47], %66 {strides = array<i32>} : memref<4x32xf32, #tpu.memory_space<vmem>>, vector<1x32xf32>,
    %c2_48 = arith.constant 2 : index
    %c0_49 = arith.constant 0 : index
    %67 = vector.load %arg7[%c2_48, %c0_49] : memref<4x32xf32, #tpu.memory_space<vmem>>, vector<1x32xf32>
    %68 = vector.shape_cast %67 : vector<1x32xf32> to vector<32xf32>
    %69 = arith.addf %68, %60 : vector<32xf32>
    %c2_50 = arith.constant 2 : index
    %c0_51 = arith.constant 0 : index
    %70 = vector.load %arg7[%c2_50, %c0_51] : memref<4x32xf32, #tpu.memory_space<vmem>>, vector<1x32xf32>
    %71 = vector.shape_cast %70 : vector<1x32xf32> to vector<32xf32>
    %72 = vector.shape_cast %69 : vector<32xf32> to vector<1x32xf32>
    tpu.vector_store %arg7[%c2_50, %c0_51], %72 {strides = array<i32>} : memref<4x32xf32, #tpu.memory_space<vmem>>, vector<1x32xf32>,
    %c0_52 = arith.constant 0 : index
    %c0_53 = arith.constant 0 : index
    %c48 = arith.constant 48 : index
    %73 = vector.load %arg2[%c0_52, %c0_53, %c48] : memref<1x32x64xf32, #tpu.memory_space<vmem>>, vector<1x32x16xf32>
    %74 = vector.shape_cast %73 : vector<1x32x16xf32> to vector<32x16xf32>
    %c0_54 = arith.constant 0 : index
    %c0_55 = arith.constant 0 : index
    %c48_56 = arith.constant 48 : index
    %75 = vector.load %arg3[%c0_54, %c0_55, %c48_56] : memref<1x32x64xf32, #tpu.memory_space<vmem>>, vector<1x32x16xf32>
    %76 = vector.shape_cast %75 : vector<1x32x16xf32> to vector<32x16xf32>
    %cst_57 = arith.constant dense<0.000000e+00> : vector<32x32xf32>
    %77 = tpu.matmul %74, %76, %cst_57 {dimension_numbers = #tpu.dot_dimension_numbers<[1], [1], [0], [0], [0, 0, 1, 0], [], []>} : vector<32x16xf32>, vector<32x16xf32>, vector<32x32xf32> -> vector<32x32xf32>
    %cst_58 = arith.constant 0xFF800000 : f32
    %78 = vector.broadcast %cst_58 : f32 to vector<32x32xf32>
    %79 = arith.select %6, %77, %78 : vector<32x32xi1>, vector<32x32xf32>
    %cst_59 = arith.constant dense<0xFF800000> : vector<32xf32>
    %80 = vector.multi_reduction <maximumf>, %79, %cst_59 [1] : vector<32x32xf32> to vector<32xf32>
    %81 = arith.mulf %4, %77 : vector<32x32xf32>
    %cst_60 = arith.constant dense<0.000000e+00> : vector<32xf32>
    %82 = vector.multi_reduction <add>, %81, %cst_60 [1] : vector<32x32xf32> to vector<32xf32>
    %c3 = arith.constant 3 : index
    %c0_61 = arith.constant 0 : index
    %83 = vector.load %arg6[%c3, %c0_61] : memref<4x32xf32, #tpu.memory_space<vmem>>, vector<1x32xf32>
    %84 = vector.shape_cast %83 : vector<1x32xf32> to vector<32xf32>
    %85 = arith.maximumf %84, %80 : vector<32xf32>
    %c3_62 = arith.constant 3 : index
    %c0_63 = arith.constant 0 : index
    %86 = vector.load %arg6[%c3_62, %c0_63] : memref<4x32xf32, #tpu.memory_space<vmem>>, vector<1x32xf32>
    %87 = vector.shape_cast %86 : vector<1x32xf32> to vector<32xf32>
    %88 = vector.shape_cast %85 : vector<32xf32> to vector<1x32xf32>
    tpu.vector_store %arg6[%c3_62, %c0_63], %88 {strides = array<i32>} : memref<4x32xf32, #tpu.memory_space<vmem>>, vector<1x32xf32>,
    %c3_64 = arith.constant 3 : index
    %c0_65 = arith.constant 0 : index
    %89 = vector.load %arg7[%c3_64, %c0_65] : memref<4x32xf32, #tpu.memory_space<vmem>>, vector<1x32xf32>
    %90 = vector.shape_cast %89 : vector<1x32xf32> to vector<32xf32>
    %91 = arith.addf %90, %82 : vector<32xf32>
    %c3_66 = arith.constant 3 : index
    %c0_67 = arith.constant 0 : index
    %92 = vector.load %arg7[%c3_66, %c0_67] : memref<4x32xf32, #tpu.memory_space<vmem>>, vector<1x32xf32>
    %93 = vector.shape_cast %92 : vector<1x32xf32> to vector<32xf32>
    %94 = vector.shape_cast %91 : vector<32xf32> to vector<1x32xf32>
    tpu.vector_store %arg7[%c3_66, %c0_67], %94 {strides = array<i32>} : memref<4x32xf32, #tpu.memory_space<vmem>>, vector<1x32xf32>,
    %c0_i32_68 = arith.constant 0 : i32
    %95 = arith.cmpi eq, %arg1, %c0_i32_68 : i32
    %96 = arith.extui %95 : i1 to i32
    %c0_i32_69 = arith.constant 0 : i32
    %97 = arith.cmpi ne, %96, %c0_i32_69 : i32
    scf.if %97 {
      %c0_70 = arith.constant 0 : index
      %c0_71 = arith.constant 0 : index
      %98 = vector.load %arg6[%c0_70, %c0_71] : memref<4x32xf32, #tpu.memory_space<vmem>>, vector<4x32xf32>
      %c0_72 = arith.constant 0 : index
      %c0_73 = arith.constant 0 : index
      %99 = vector.load %arg7[%c0_72, %c0_73] : memref<4x32xf32, #tpu.memory_space<vmem>>, vector<4x32xf32>
      %cst_74 = arith.constant 3.125000e-02 : f32
      %100 = vector.broadcast %cst_74 : f32 to vector<4x32xf32>
      %101 = arith.mulf %99, %100 : vector<4x32xf32>
      %102 = arith.subf %98, %101 : vector<4x32xf32>
      %c0_75 = arith.constant 0 : index
      %c0_76 = arith.constant 0 : index
      %c0_77 = arith.constant 0 : index
      %103 = vector.load %arg5[%c0_75, %c0_76, %c0_77] : memref<1x4x32xf32, #tpu.memory_space<vmem>>, vector<1x4x32xf32>
      %104 = vector.shape_cast %103 : vector<1x4x32xf32> to vector<4x32xf32>
      %105 = vector.shape_cast %102 : vector<4x32xf32> to vector<1x4x32xf32>
      tpu.vector_store %arg5[%c0_75, %c0_76, %c0_77], %105 {strides = array<i32>} : memref<1x4x32xf32, #tpu.memory_space<vmem>>, vector<1x4x32xf32>,
    } else {
    }
    return
  }
  func.func @transform_0(%arg0: i32, %arg1: i32) -> (i32, i32, i32) {
    %c0_i32 = arith.constant 0 : i32
    %c0_i32_0 = arith.constant 0 : i32
    %c0_i32_1 = arith.constant 0 : i32
    return %arg0, %c0_i32, %c0_i32_0 : i32, i32, i32
  }
  func.func @transform_1(%arg0: i32, %arg1: i32) -> (i32, i32, i32) {
    %c0_i32 = arith.constant 0 : i32
    %c0_i32_0 = arith.constant 0 : i32
    return %arg0, %arg1, %c0_i32 : i32, i32, i32
  }
  func.func @transform_2(%arg0: i32, %arg1: i32) -> (i32, i32) {
    %c0_i32 = arith.constant 0 : i32
    %c0_i32_0 = arith.constant 0 : i32
    return %c0_i32, %arg1 : i32, i32
  }
  func.func @transform_3(%arg0: i32, %arg1: i32) -> (i32, i32, i32) {
    %c0_i32 = arith.constant 0 : i32
    %c0_i32_0 = arith.constant 0 : i32
    %c0_i32_1 = arith.constant 0 : i32
    return %arg0, %c0_i32, %c0_i32_0 : i32, i32, i32
  }
}

</mosaic_0001>

<bundles_post_ra>
// kernel: tpu_custom_call.1
= control target key start
LH: loop header
LB: loop body
LE: loop exit
PB: predicated region body
PF: predicated region fallthrough
CT: control target
= control target key end

     0   :  { %s2324_s0 = inlined_call_operand.hbm [shape: f32[2,32,64], index: 0, kind: input, shape index: {}]   ;;  %s2325_s1 = inlined_call_operand.hbm [shape: f32[2,32,64], index: 1, kind: input, shape index: {}]   ;;  %s2326_s2 = inlined_call_operand.hbm [shape: s8[32,32], index: 2, kind: input, shape index: {}]   ;;  %s2327_s3 = inlined_call_operand.hbm [shape: f32[2,4,32], index: 3, kind: output, shape index: {}]  }
   0x1   :  { %2333 = sst [smem:[#allocation15_spill]] %s2324_s0 }
   0x2   :  { %2334 = sst [smem:[#allocation16_spill]] %s2326_s2 }
   0x3   :  { %8 = vsyncpa [#allocation5], 0 }
   0x4   :  { %10 = vsyncpa [#allocation5 + $0x1], 0 }
   0x5   :  { %11 = vsyncpa [#allocation8], 0 }
   0x6   :  { %13 = vsyncpa [#allocation8 + $0x1], 0 }
   0x7   :  { %14 = vsyncpa [#allocation6], 0 }
   0x8   :  { %16 = vsyncpa [#allocation6 + $0x1], 0  ;;  %s1810_s12 = smov 0   ;;  %s1812_s13 = smov 0  }
   0x9   :  { %s1814_s14 = smov 0   ;;  %s1816_s15 = smov 0  }
   0xa   :  { %s1818_s16 = smov 0   ;;  %s1820_s17 = smov 0  }
   0xb LB: > { %s1841_s18 = sadd.s32 4294967295, %s1777_s17   ;;  %s1295_s19 = sadd.s32 4294967294, %s1777_s17   ;;  %s1777_s17 = sphi %s1820_s17, %s22_s17   ;;  %s1773_s16 = sphi %s1818_s16, %s2360_s16   ;;  %s1769_s15 = sphi %s1816_s15, %s2359_s15   ;;  %s1765_s14 = sphi %s1814_s14, %s2358_s14   ;;  %s1761_s13 = sphi %s1812_s13, %s2357_s13   ;;  %s1757_s12 = sphi %s1810_s12, %s2356_s12  }
   0xc   : > { %s41_s20 = sadd.s32 1, %s1765_s14  ;;  %p48_p0 = scmp.ne.s32.totalorder %s1765_s14, %s1761_s13 }
   0xd   : > { %p49_p1 = scmp.eq.s32.totalorder %s1777_s17, 0  ;;  %p54_p2 = scmp.ne.s32.totalorder %s1761_s13, %s1757_s12 }
   0xe   : > { %p2328_p3 = scmp.eq.s32.totalorder %s1841_s18, 0  ;;  %p132_p4 = scmp.eq.s32.totalorder %s1841_s18, 1 }
   0xf   : > { %p1852_p5 = por %p49_p1, %p48_p0  ;;  %p138_p6 = scmp.eq.s32.totalorder %s1295_s19, 1 }
  0x10   : > { %p1858_p7 = por %p2328_p3, %p54_p2  ;;  %p1862_p8 = por %p132_p4, %p48_p0 }
  0x11   : > { %p1866_p9 = por %p138_p6, %p54_p2  ;;  %p1296_p10 = scmp.ge.s32.totalorder %s1777_s17, 1 }
  0x12   : > { %s2336_s22 = scalar_select %p1858_p7, 1, 0 }
  0x13   : > { %s2337_s23 = scalar_select %p1862_p8, 1, 0 }
  0x14   : > { %s2338_s24 = scalar_select %p1866_p9, 1, 0 }
  0x15   : > { %p145_p11 = scmp.lt.s32.totalorder %s1777_s17, 3  ;;  %s1779_s26 = smov [#allocation9]  }
  0x16   : > { %s160_s27 = sshll.u32 %s1779_s26, 4  ;;  %p1510_p1 = scmp.lt.s32.totalorder %s1777_s17, 2  ;;  %s161_s27 = int_to_ptr.vmem [resolvable:$true] %s160_s27 }
  0x17   : > { %p1873_p13 = pnand %p1296_p10, %p145_p11  ;;  %s34_s30 = sadd.s32 1, %s1773_s16 }
  0x18   : > { %p1882_p4 = pnand %p1510_p1, %p1852_p5  ;;  %p1893_p6 = scmp.ge.s32.totalorder %s34_s30, 2 }
  0x19   : > { %s2339_s25 = scalar_select %p1873_p13, 1, 0 }
  0x1a   : > { %p1494_p0 = pneg %p1873_p13  ;;  %s171_s5 = sand.u32 1, %s1765_s14  }
  0x1b   : > { %s2340_s28 = scalar_select %p1882_p4, 1, 0 }
  0x1c   : > { %p1888_p2 = pnand %p1494_p0, %p2328_p3  ;;  %s2343_s2 = sld [smem:[#allocation16_spill]] }
  0x1d   : > { %s2342_s4 = scalar_select %p1893_p6, 1, 0 }
  0x1e   : > { %p1601_p10 = pneg %p1888_p2 }
  0x22   : > { %s1599_s8 = scalar_lea.hbm %s2343_s2, 128 }
  0x23   : > { %p1600_p5 = scmp.ne.s32.totalorder %s2343_s2, %s1599_s8  ;;  %p1606_p0 = scmp.lt.u32.totalorder %s1599_s8, %s2343_s2 }
  0x25   : > { %p1602_p11 = pnand %p1601_p10, %p1600_p5 }
  0x27   : > { %p1603_p1 = pneg %p1602_p11 }
  0x29   : > { %p1608_p12 = pnand %p1606_p0, %p1603_p1 }
  0x2b   : > { %1611 = shalt.err (!%p1608_p12)
}
  0x2c   : > { %s1612_s21 = scalar_lea.vmem %s161_s27, 128  ;;  %p1620_p7 = scmp.lt.s32.totalorder %s161_s27, %s161_s27 }
  0x2d   : > { %p1613_p3 = scmp.ne.s32.totalorder %s161_s27, %s1612_s21  ;;  %p1621_p13 = scmp.lt.s32.totalorder %s1612_s21, %s1612_s21 }
  0x2f   : > { %p1615_p9 = pnand %p1613_p3, %p1601_p10  ;;  %p1622_p4 = por %p1621_p13, %p1620_p7 }
  0x31   : > { %p1616_p8 = pneg %p1615_p9 }
  0x33   : > { %p1623_p6 = pnand %p1622_p4, %p1616_p8 }
  0x35   : > { %1626 = shalt.err (!%p1623_p6)
}
  0x36   : > { %1497 = dma.hbm_to_vmem [thread:$0]  (!%p1888_p2), %s2343_s2, 128, %s161_s27, [#allocation8]  }
  0x37   : > { %p2344_p3 = scmp.ne.s32.totalorder %s2342_s4, 0  ;;  %s1918_s7 = sshll.u32 %s171_s5, 5 }
  0x38   : > { %s1346_s8 = sshll.u32 %s1773_s16, 9  ;;  %s2345_s0 = sld [smem:[#allocation15_spill]] }
  0x39   : > { %s2362_s30 = smov (%p2344_p3, %s34_s30), 0  ;;  %s175_s27 = scalar_lea.vmem [#allocation4], %s1918_s7 }
  0x3a   : > { %s38_s29 = ssub.s32 %s1773_s16, %s2362_s30  ;;  %s182_s4 = sshll.u32 %s175_s27, 4  ;;  %s1936_s4 = int_to_ptr.vmem [resolvable:$true] %s182_s4 }
  0x3b   : > { %p39_p7 = scmp.eq.s32.totalorder %s38_s29, 0  ;;  %s1938_s21 = scalar_lea.sflag [#allocation5], %s171_s5 }
  0x3c   : > { %p2346_p9 = scmp.ne.s32.totalorder %s2340_s28, 0 }
  0x3d   : > { %s1934_s19 = scalar_select %p39_p7, %s1765_s14, %s41_s20  }
  0x3e   : > { %s1928_s11 = scalar_lea.hbm %s2345_s0, %s1346_s8  ;;  %p1629_p12 = pneg %p2346_p9 }
  0x3f   : > { %s1627_s26 = scalar_lea.hbm %s1928_s11, 512  ;;  %s1632_s9 = scalar_lea.hbm %s2345_s0, 1024 }
  0x40   : > { %p1628_p8 = scmp.ne.s32.totalorder %s1928_s11, %s1627_s26  ;;  %p1633_p2 = scmp.lt.u32.totalorder %s1928_s11, %s2345_s0 }
  0x41   : > { %p1634_p6 = scmp.lt.u32.totalorder %s1632_s9, %s1627_s26  ;;  %p1636_p10 = scmp.lt.u32.totalorder %s1627_s26, %s1928_s11 }
  0x42   : > { %p1630_p13 = pnand %p1629_p12, %p1628_p8 }
  0x43   : > { %p1635_p5 = por %p1634_p6, %p1633_p2 }
  0x44   : > { %p1631_p4 = pneg %p1630_p13 }
  0x45   : > { %p1637_p11 = por %p1636_p10, %p1635_p5 }
  0x47   : > { %p1638_p1 = pnand %p1637_p11, %p1631_p4 }
  0x49   : > { %1641 = shalt.err (!%p1638_p1)
}
  0x4a   : > { %s1642_s20 = scalar_lea.vmem %s1936_s4, 512  ;;  %s1780_s5 = smov [#allocation4]  }
  0x4b   : > { %p1643_p0 = scmp.ne.s32.totalorder %s1936_s4, %s1642_s20  ;;  %s1647_s6 = sshll.u32 %s1780_s5, 4  ;;  %s1648_s6 = int_to_ptr.vmem [resolvable:$false] %s1647_s6 }
  0x4c   : > { %s1649_s29 = scalar_lea.vmem %s1648_s6, 1024  ;;  %p1650_p8 = scmp.lt.s32.totalorder %s1936_s4, %s1648_s6 }
  0x4d   : > { %p1645_p3 = pnand %p1643_p0, %p1629_p12  ;;  %p1651_p13 = scmp.lt.s32.totalorder %s1649_s29, %s1642_s20 }
  0x4f   : > { %p1646_p7 = pneg %p1645_p3  ;;  %p1652_p2 = por %p1651_p13, %p1650_p8 }
  0x51   : > { %p1653_p6 = pnand %p1652_p2, %p1646_p7 }
  0x53   : > { %1656 = shalt.err (!%p1653_p6)
}
  0x54   : > { %s1781_s26 = smov 128   ;;  %s1782_s9 = smov 8  }
  0x55   : > { %1501 = dma.hbm_to_vmem [thread:$0]  (!%p2346_p9), %s1928_s11, 512, %s1936_s4, %s1938_s21, %s1781_s26, %s1781_s26, %s1782_s9  }
  0x56   : > { %s1974_s20 = scalar_lea.hbm %s2325_s1, %s1346_s8  ;;  %s196_s5 = scalar_lea.vmem [#allocation7], %s1918_s7 }
  0x57   : > { %s205_s6 = sshll.u32 %s196_s5, 4  ;;  %s192_s29 = sand.u32 1, %s1777_s17   ;;  %s1977_s6 = int_to_ptr.vmem [resolvable:$true] %s205_s6 }
  0x58   : > { %s1980_s0 = scalar_lea.sflag [#allocation8], %s192_s29  ;;  %s1657_s2 = scalar_lea.hbm %s1974_s20, 512 }
  0x59   : > { %p1658_p4 = scmp.ne.s32.totalorder %s1974_s20, %s1657_s2  ;;  %s1662_s4 = scalar_lea.hbm %s2325_s1, 1024 }
  0x5a   : > { %p1663_p11 = scmp.lt.u32.totalorder %s1974_s20, %s2325_s1  ;;  %p1664_p1 = scmp.lt.u32.totalorder %s1662_s4, %s1657_s2 }
  0x5b   : > { %p1660_p5 = pnand %p1658_p4, %p1629_p12  ;;  %p1666_p3 = scmp.lt.u32.totalorder %s1657_s2, %s1974_s20 }
  0x5c   : > { %p1665_p0 = por %p1664_p1, %p1663_p11 }
  0x5d   : > { %p1661_p10 = pneg %p1660_p5 }
  0x5e   : > { %p1667_p7 = por %p1666_p3, %p1665_p0 }
  0x60   : > { %p1668_p8 = pnand %p1667_p7, %p1661_p10 }
  0x62   : > { %1671 = shalt.err (!%p1668_p8)
}
  0x63   : > { %s1672_s7 = scalar_lea.vmem %s1977_s6, 512  ;;  %s1783_s27 = smov [#allocation7]  }
  0x64   : > { %p1673_p13 = scmp.ne.s32.totalorder %s1977_s6, %s1672_s7  ;;  %s1677_s5 = sshll.u32 %s1783_s27, 4  ;;  %s1678_s5 = int_to_ptr.vmem [resolvable:$false] %s1677_s5 }
  0x65   : > { %s1679_s29 = scalar_lea.vmem %s1678_s5, 1024  ;;  %p1680_p4 = scmp.lt.s32.totalorder %s1977_s6, %s1678_s5 }
  0x66   : > { %p1675_p2 = pnand %p1673_p13, %p1629_p12  ;;  %p1681_p5 = scmp.lt.s32.totalorder %s1679_s29, %s1672_s7 }
  0x68   : > { %p1676_p6 = pneg %p1675_p2  ;;  %p1682_p11 = por %p1681_p5, %p1680_p4 }
  0x6a   : > { %p1683_p1 = pnand %p1682_p11, %p1676_p6 }
  0x6c   : > { %1686 = shalt.err (!%p1683_p1)
}
  0x6d   : > { %1504 = dma.hbm_to_vmem [thread:$0]  (!%p2346_p9), %s1974_s20, 512, %s1977_s6, %s1980_s0, %s1781_s26, %s1781_s26, %s1782_s9  }
  0x6e   : > { %p2347_p12 = scmp.ne.s32.totalorder %s2339_s25, 0 }
  0x6f   : > { %s2012_s2 = sand.u32 (!%p2347_p12), 1, %s1761_s13   ;;  %p2348_p10 = scmp.ne.s32.totalorder (!%p2347_p12), %s2336_s22, 0 }
  0x70   : > { %217 = sbr.rel (%p2347_p12) target bundleno = 694 (0x2b6), region = 32  ;;  %s1306_s11 = sshll.u32 (!%p2347_p12), %s2012_s2, 5 }
  0x71   : > { %s220_s8 = scalar_lea.sflag (!%p2347_p12), [#allocation5], %s2012_s2  ;;  %s2016_s4 = scalar_lea.vmem (!%p2347_p12), [#allocation4], %s1306_s11 }
  0x77   : > { %1740 = dma.done.wait (%p2348_p10), %s220_s8, 512  }
  0x78   : > { %1742 = vsyncadd (%p2348_p10), %s220_s8, 4294966784  ;;  %s228_s0 = sand.u32 1, %s1841_s18   ;;  %s232_s28 = scalar_lea.vmem [#allocation7], %s1306_s11 }
  0x79   : > { %s229_s25 = scalar_lea.sflag [#allocation8], %s228_s0 }
  0x7a   : > { %1744 = dma.done.wait (%p2348_p10), %s229_s25, 512  }
  0x7b   : > { %1746 = vsyncadd (%p2348_p10), %s229_s25, 4294966784  ;;  %p2349_p9 = scmp.eq.s32.totalorder %s1841_s18, 0 }
  0x7d   : > { %1748 = dma.done.wait (%p2349_p9), [#allocation8], 128   ;;  %p2350_p0 = pmov %p2349_p9 }
  0x7e   : > { %vm293_vm0 = vcmask 130048   ;;  %v503_v0 = vld [vmem:[%s232_s28] sm:$0xff]  ;;  %v504_v1 = vld [vmem:[%s232_s28 + $0x8] sm:$0xff]  ;;  %v505_v2 = vld [vmem:[%s232_s28 + $0x10] sm:$0xff]  ;;  %s1784_s18 = smov 112   ;;  %s1785_s22 = smov 96  }
  0x7f   : > { %1750 = vsyncadd (%p2350_p0), [#allocation8], 4294967168  ;;  %v1569_v3 = vpack.i.bf16 %v504_v1, %v503_v0  ;;  %v506_v4 = vld [vmem:[%s232_s28 + $0x18] sm:$0xff]  ;;  %v499_v5 = vld [vmem:[%s2016_s4] sm:$0xff]  ;;  %v1436_v6 = vpack.c.bf16 %v504_v1, %v503_v0  ;;  %s1786_s26 = smov 80   ;;  %vm407_vm4 = vcmask 261120  }
  0x80   : > { %vm2034_vm1 = vmpackc.low %vm293_vm0, %vm293_vm0  ;;  %v1442_v8 = vpack.c.bf16 %v506_v4, %v505_v2  ;;  %1388 = vmatprep.mubr.msk.f32.mxu0 %vm293_vm0, %v499_v5  ;;  %v1574_v9 = vpack.i.bf16 %v506_v4, %v505_v2  ;;  %v500_v10 = vld [vmem:[%s2016_s4 + $0x8] sm:$0xff]  ;;  %v501_v11 = vld [vmem:[%s2016_s4 + $0x10] sm:$0xff]  ;;  %vm269_vm7 = vcmask 257024   ;;  %vm452_vm8 = vcmask 130112   ;;  %s1309_s9 = sshll.u32 %s2012_s2, 2  ;;  %s1343_s20 = sshll.u32 %s1769_s15, 6 }
  0x81   : > { %1570 = vrot.lane.b32.xlu0 %v1569_v3, %s1784_s18  ;;  %1580 = vrot.lane.b32.xlu1 %v1569_v3, %s1785_s22  ;;  %v502_v12 = vld [vmem:[%s2016_s4 + $0x18] sm:$0xff]  ;;  %v272_v49 = vld [vmem:[#allocation9] sm:$0xff]  ;;  %vm459_vm9 = vcmask 195712   ;;  %vm466_vm10 = vcmask 261312   ;;  %vm470_vm11 = vcmask 253952   ;;  %s263_s6 = scalar_lea.vmem [#allocation10], %s1309_s9  ;;  %s2274_s27 = scalar_lea.hbm %s2327_s3, %s1343_s20 }
  0x82   : > { %1438 = vmatprep.subr.msk.bf16.mxu0 %vm2034_vm1, %v1436_v6  ;;  %v273_v50 = vunpack.c.0.s8 %v272_v49  ;;  %v274_v51 = vunpack.c.1.s8 %v272_v49  ;;  %v276_v53 = vunpack.c.3.s8 %v272_v49  ;;  %v275_v56 = vunpack.c.2.s8 %v272_v49  ;;  %s1179_s21 = sshll.u32 %s263_s6, 4  ;;  %s1166_s5 = scalar_lea.sflag [#allocation6], %s2012_s2  ;;  %s2276_s21 = int_to_ptr.vmem [resolvable:$true] %s1179_s21 }
  0x83   : > { %1441 = vmatpush3.bf16.xpose.msk.msra.mxu0 %vm2034_vm1, %v1436_v6  ;;  %s1687_s29 = scalar_lea.vmem %s2276_s21, 64  ;;  %p2353_p7 = scmp.ne.s32.totalorder %s2337_s23, 0 }
  0x84   : > { %1444 = vmatprep.subr.msk.bf16.mxu0 %vm2034_vm1, %v1442_v8  ;;  %v2089_v52 = vcvt.s32.f32 %v273_v50  ;;  %v2091_v54 = vcvt.s32.f32 %v274_v51  ;;  %v2095_v55 = vcvt.s32.f32 %v276_v53  ;;  %v2106_v1 = vcvt.s32.f32 %v275_v56  ;;  %p1688_p3 = scmp.ne.s32.totalorder %s2276_s21, %s1687_s29  ;;  %s1789_s15 = smov [#allocation10]  }
  0x85   : > { %1575 = vrot.lane.b32.xlu0 %v1574_v9, %s1784_s18  ;;  %1585 = vrot.lane.b32.xlu1 %v1569_v3, %s1786_s26  ;;  %s1691_s11 = sshll.u32 %s1789_s15, 4  ;;  %s1692_s11 = int_to_ptr.vmem [resolvable:$false] %s1691_s11 }
  0x86   : > { %vm282_vm2 = vcmp.gt.f32.partialorder %v2091_v54, 0.0  ;;  %vm281_vm3 = vcmp.gt.f32.partialorder %v2089_v52, 0.0  ;;  %vm284_vm5 = vcmp.gt.f32.partialorder %v2095_v55, 0.0  ;;  %vm283_vm6 = vcmp.gt.f32.partialorder %v2106_v1, 0.0  ;;  %p1689_p8 = pnand %p1688_p3, %p2353_p7  ;;  %s1693_s8 = scalar_lea.vmem %s1692_s11, 128 }
  0x87   : > { %p1694_p2 = scmp.lt.s32.totalorder %s2276_s21, %s1692_s11  ;;  %p1695_p6 = scmp.lt.s32.totalorder %s1693_s8, %s1687_s29 }
  0x88   : > { %p1690_p13 = pneg %p1689_p8 }
  0x89   : > { %511 = vrot.lane.b32.xlu0 %v499_v5, %s1784_s18  ;;  %513 = vrot.lane.b32.xlu1 %v500_v10, %s1784_s18  ;;  %p1696_p4 = por %p1695_p6, %p1694_p2 }
  0x8b   : > { %1447 = vmatpush3.bf16.xpose.msk.msra.mxu0 %vm2034_vm1, %v1442_v8  ;;  %p1697_p5 = pnand %p1696_p4, %p1690_p13 }
  0x8d   : > { %1590 = vrot.lane.b32.xlu0 %v1574_v9, %s1785_s22  ;;  %1595 = vrot.lane.b32.xlu1 %v1574_v9, %s1786_s26 }
  0x91   : > { %515 = vrot.lane.b32.xlu0 %v501_v11, %s1784_s18  ;;  %517 = vrot.lane.b32.xlu1 %v502_v12, %s1784_s18 }
  0x92   : > { %1389 = vmatmul.mubr.msk.f32.vlgmr.msra.gmra.mrb[0].mxu0 %vm293_vm0, %v500_v10 }
  0x93   : > { %1391 = vmatprep.mubr.msk.f32.mxu0 %vm293_vm0, %v501_v11 }
  0x95   : > { %730 = vrot.lane.b32.xlu0 %v499_v5, %s1785_s22  ;;  %949 = vrot.lane.b32.xlu1 %v499_v5, %s1786_s26 }
  0x96   : > { %1392 = vmatmul.mubr.msk.f32.gmra.mrb[2].mxu0 %vm293_vm0, %v502_v12 }
  0x99   : > { %732 = vrot.lane.b32.xlu0 %v500_v10, %s1785_s22  ;;  %951 = vrot.lane.b32.xlu1 %v500_v10, %s1786_s26 }
  0x9d   : > { %734 = vrot.lane.b32.xlu0 %v501_v11, %s1785_s22  ;;  %953 = vrot.lane.b32.xlu1 %v501_v11, %s1786_s26 }
  0xa1   : > { %736 = vrot.lane.b32.xlu0 %v502_v12, %s1785_s22  ;;  %955 = vrot.lane.b32.xlu1 %v502_v12, %s1786_s26 }
  0xf3   : > { %v1571_v13 = vpop.permute.xlu0 %1570  ;;  %v1581_v14 = vpop.permute.xlu1 %1580 }
  0xf4   : > { %v1573_v15 = vunpack.i.h.bf16 %v1571_v13  ;;  %v1572_v16 = vunpack.i.l.bf16 %v1571_v13  ;;  %v1583_v17 = vunpack.i.h.bf16 %v1581_v14  ;;  %v1582_v18 = vunpack.i.l.bf16 %v1581_v14 }
  0xf5   : > { %v1787_v14 = vmov -inf  }
  0xf6   : > { %v1460_v19 = vpack.c.bf16 %v1583_v17, %v1582_v18  ;;  %v1448_v20 = vpack.c.bf16 %v1573_v15, %v1572_v16  ;;  %270 = vst.msk [vmem:[#allocation2] sm:$0xf] %vm269_vm7, %v1787_v14  ;;  %v1788_v15 = vmov 0.0  }
  0xf7   : > { %v1576_v21 = vpop.permute.xlu0 %1575  ;;  %v1586_v22 = vpop.permute.xlu1 %1585  ;;  %271 = vst.msk [vmem:[#allocation3] sm:$0xf] %vm269_vm7, %v1788_v15 }
  0xf8   : > { %v1578_v23 = vunpack.i.h.bf16 %v1576_v21  ;;  %v1577_v24 = vunpack.i.l.bf16 %v1576_v21  ;;  %1450 = vmatprep.subr.msk.bf16.mxu1 %vm2034_vm1, %v1448_v20  ;;  %1462 = vmatprep.subr.msk.bf16.mxu0 %vm2034_vm1, %v1460_v19  ;;  %v1588_v26 = vunpack.i.h.bf16 %v1586_v22  ;;  %v1587_v27 = vunpack.i.l.bf16 %v1586_v22 }
  0xf9   : > { %1453 = vmatpush3.bf16.xpose.msk.msra.mxu1 %vm2034_vm1, %v1448_v20  ;;  %1465 = vmatpush3.bf16.xpose.msk.msra.mxu0 %vm2034_vm1, %v1460_v19 }
  0xfa   : > { %v1454_v25 = vpack.c.bf16 %v1578_v23, %v1577_v24  ;;  %v1472_v30 = vpack.c.bf16 %v1588_v26, %v1587_v27 }
  0xfb   : > { %v512_v28 = vpop.permute.xlu0 %511  ;;  %v514_v29 = vpop.permute.xlu1 %513 }
  0xfc   : > { %1456 = vmatprep.subr.msk.bf16.mxu1 %vm2034_vm1, %v1454_v25  ;;  %1402 = vmatprep.mubr.msk.f32.mxu1 %vm293_vm0, %v512_v28 }
  0xff   : > { %v1591_v31 = vpop.permute.xlu0 %1590  ;;  %v1596_v32 = vpop.permute.xlu1 %1595 }
 0x100   : > { %v1593_v33 = vunpack.i.h.bf16 %v1591_v31  ;;  %v1592_v34 = vunpack.i.l.bf16 %v1591_v31  ;;  %v1598_v36 = vunpack.i.h.bf16 %v1596_v32  ;;  %v1597_v37 = vunpack.i.l.bf16 %v1596_v32 }
 0x101   : > { %1459 = vmatpush3.bf16.xpose.msk.msra.mxu1 %vm2034_vm1, %v1454_v25 }
 0x102   : > { %v1466_v35 = vpack.c.bf16 %v1593_v33, %v1592_v34  ;;  %1474 = vmatprep.subr.msk.bf16.mxu1 %vm2034_vm1, %v1472_v30  ;;  %v1478_v40 = vpack.c.bf16 %v1598_v36, %v1597_v37 }
 0x103   : > { %v516_v38 = vpop.permute.xlu0 %515  ;;  %v518_v39 = vpop.permute.xlu1 %517 }
 0x104   : > { %1468 = vmatprep.subr.msk.bf16.mxu0 %vm2034_vm1, %v1466_v35 }
 0x105   : > { %1471 = vmatpush3.bf16.xpose.msk.msra.mxu0 %vm2034_vm1, %v1466_v35 }
 0x107   : > { %v731_v41 = vpop.permute.xlu0 %730  ;;  %v950_v42 = vpop.permute.xlu1 %949 }
 0x108   : > { %1403 = vmatmul.mubr.msk.f32.vlgmr.msra.gmra.mrb[0].mxu1 %vm293_vm0, %v514_v29  ;;  %1416 = vmatprep.mubr.msk.f32.mxu0 %vm293_vm0, %v731_v41 }
 0x109   : > { %1405 = vmatprep.mubr.msk.f32.mxu1 %vm293_vm0, %v516_v38  ;;  %1477 = vmatpush3.bf16.xpose.msk.msra.mxu1 %vm2034_vm1, %v1472_v30 }
 0x10a   : > { %1480 = vmatprep.subr.msk.bf16.mxu1 %vm2034_vm1, %v1478_v40 }
 0x10b   : > { %v733_v43 = vpop.permute.xlu0 %732  ;;  %v952_v44 = vpop.permute.xlu1 %951 }
 0x10c   : > { %1417 = vmatmul.mubr.msk.f32.vlgmr.msra.gmra.mrb[4].mxu0 %vm293_vm0, %v733_v43  ;;  %1406 = vmatmul.mubr.msk.f32.gmra.mrb[2].mxu1 %vm293_vm0, %v518_v39 }
 0x10d   : > { %1430 = vmatprep.mubr.msk.f32.mxu1 %vm293_vm0, %v950_v42 }
 0x10f   : > { %v735_v45 = vpop.permute.xlu0 %734  ;;  %v954_v47 = vpop.permute.xlu1 %953 }
 0x110   : > { %1419 = vmatprep.mubr.msk.f32.mxu0 %vm293_vm0, %v735_v45 }
 0x111   : > { %1483 = vmatpush3.bf16.xpose.msk.msra.mxu1 %vm2034_vm1, %v1478_v40 }
 0x113   : > { %v737_v46 = vpop.permute.xlu0 %736  ;;  %v956_v48 = vpop.permute.xlu1 %955 }
 0x114   : > { %1420 = vmatmul.mubr.msk.f32.gmra.mrb[6].mxu0 %vm293_vm0, %v737_v46 }
 0x118   : > { %1431 = vmatmul.mubr.msk.f32.vlgmr.msra.gmra.mrb[4].mxu1 %vm293_vm0, %v952_v44 }
 0x119   : > { %1433 = vmatprep.mubr.msk.f32.mxu1 %vm293_vm0, %v954_v47 }
 0x11c   : > { %1434 = vmatmul.mubr.msk.f32.gmra.mrb[6].mxu1 %vm293_vm0, %v956_v48  ;;  %v441_v48 = vlaneseq }
 0x165   : > { %v1390_v57 = vpop.f32.mrb[0].mxu0 }
 0x166   : > { %v421_v58 = vmul.f32 %v1390_v57, %v2091_v54  ;;  %v384_v59 = vpop.f32.mrb[1].mxu0  ;;  %v404_v60 = vsel %vm282_vm2, %v1390_v57, -inf  ;;  %v442_v57 = vand.u32 127, %v441_v48 }
 0x167   : > { %v420_v61 = vmul.f32 %v384_v59, %v2089_v52  ;;  %v403_v62 = vsel %vm281_vm3, %v384_v59, -inf  ;;  %v411_v63 = vsel %vm407_vm4, %v404_v60, -inf }
 0x168   : > { %v408_v0 = vsel %vm407_vm4, %v403_v62, -inf  ;;  %412 = vmax.xlane.f32.xlu1 %v411_v63  ;;  %v427_v4 = vsel %vm407_vm4, %v421_v58, 0.0 }
 0x169   : > { %409 = vmax.xlane.f32.xlu0 %v408_v0  ;;  %v1393_v2 = vpop.f32.mrb[2].mxu0  ;;  %v424_v3 = vsel %vm407_vm4, %v420_v61, 0.0  ;;  %v444_v61 = vshrl.u32 %v441_v48, 7 }
 0x16a   : > { %v394_v5 = vpop.f32.mrb[3].mxu0  ;;  %v406_v6 = vsel %vm284_vm5, %v1393_v2, -inf  ;;  %v423_v11 = vmul.f32 %v1393_v2, %v2095_v55 }
 0x16b   : > { %v422_v7 = vmul.f32 %v394_v5, %v2106_v1  ;;  %v417_v9 = vsel %vm407_vm4, %v406_v6, -inf  ;;  %v405_v10 = vsel %vm283_vm6, %v394_v5, -inf  ;;  %v2166_v5 = vsub.s32 %v442_v57, %v444_v61 }
 0x16c   : > { %425 = vadd.xlane.f32.xlu1 %v424_v3  ;;  %v414_v12 = vsel %vm407_vm4, %v405_v10, -inf  ;;  %v433_v13 = vsel %vm407_vm4, %v423_v11, 0.0  ;;  %v447_v3 = vadd.s32 4294967288, %v442_v57  ;;  %v461_v6 = vadd.s32 4294967272, %v442_v57 }
 0x16d   : > { %428 = vadd.xlane.f32.xlu0 %v427_v4  ;;  %v430_v8 = vsel %vm407_vm4, %v422_v7, 0.0 }
 0x16e   : > { %v2171_v10 = vsub.s32 %v447_v3, %v444_v61  ;;  %v664_v3 = vld [vmem:[#allocation2 + $0x1] sm:$0x1] }
 0x170   : > { %431 = vadd.xlane.f32.xlu1 %v430_v8 }
 0x171   : > { %418 = vmax.xlane.f32.xlu0 %v417_v9 }
 0x175   : > { %415 = vmax.xlane.f32.xlu0 %v414_v12  ;;  %v454_v12 = vadd.s32 4294967280, %v442_v57 }
 0x179   : > { %434 = vadd.xlane.f32.xlu0 %v433_v13 }
 0x1db   : > { %v1404_v16 = vpop.f32.mrb[0].mxu1 }
 0x1dc   : > { %v613_v17 = vpop.f32.mrb[1].mxu1  ;;  %v633_v18 = vsel %vm282_vm2, %v1404_v16, -inf  ;;  %v649_v27 = vmul.f32 %v1404_v16, %v2091_v54 }
 0x1dd   : > { %v639_v19 = vsel %vm407_vm4, %v633_v18, -inf  ;;  %v632_v20 = vsel %vm281_vm3, %v613_v17, -inf  ;;  %v648_v30 = vmul.f32 %v613_v17, %v2089_v52  ;;  %v2179_v17 = vsub.s32 %v461_v6, %v444_v61 }
 0x1de   : > { %640 = vmax.xlane.f32.xlu0 %v639_v19  ;;  %v636_v21 = vsel %vm407_vm4, %v632_v20, -inf  ;;  %v655_v33 = vsel %vm407_vm4, %v649_v27, 0.0 }
 0x1df   : > { %v1418_v22 = vpop.f32.mrb[4].mxu0  ;;  %637 = vmax.xlane.f32.xlu1 %v636_v21  ;;  %v1407_v23 = vpop.f32.mrb[2].mxu1  ;;  %v652_v35 = vsel %vm407_vm4, %v648_v30, 0.0 }
 0x1e0   : > { %v832_v24 = vpop.f32.mrb[5].mxu0  ;;  %v852_v25 = vsel %vm282_vm2, %v1418_v22, -inf  ;;  %v623_v26 = vpop.f32.mrb[3].mxu1  ;;  %v868_v32 = vmul.f32 %v1418_v22, %v2091_v54  ;;  %v635_v37 = vsel %vm284_vm5, %v1407_v23, -inf  ;;  %v651_v47 = vmul.f32 %v1407_v23, %v2095_v55 }
 0x1e1   : > { %v858_v28 = vsel %vm407_vm4, %v852_v25, -inf  ;;  %v851_v29 = vsel %vm281_vm3, %v832_v24, -inf  ;;  %v867_v34 = vmul.f32 %v832_v24, %v2089_v52  ;;  %v634_v40 = vsel %vm283_vm6, %v623_v26, -inf }
 0x1e2   : > { %859 = vmax.xlane.f32.xlu0 %v858_v28  ;;  %v855_v31 = vsel %vm407_vm4, %v851_v29, -inf  ;;  %v874_v39 = vsel %vm407_vm4, %v868_v32, 0.0  ;;  %v645_v42 = vsel %vm407_vm4, %v635_v37, -inf  ;;  %v642_v45 = vsel %vm407_vm4, %v634_v40, -inf }
 0x1e3   : > { %856 = vmax.xlane.f32.xlu1 %v855_v31  ;;  %v871_v41 = vsel %vm407_vm4, %v867_v34, 0.0  ;;  %v661_v56 = vsel %vm407_vm4, %v651_v47, 0.0  ;;  %v650_v63 = vmul.f32 %v623_v26, %v2106_v1  ;;  %v2184_v22 = vsub.s32 %v454_v12, %v444_v61  ;;  %v436_v34 = vld [vmem:[#allocation2] sm:$0x1] }
 0x1e5   : > { %v658_v8 = vsel %vm407_vm4, %v650_v63, 0.0 }
 0x1e6   : > { %656 = vadd.xlane.f32.xlu0 %v655_v33 }
 0x1e7   : > { %653 = vadd.xlane.f32.xlu1 %v652_v35  ;;  %v2141_v36 = vpop.f32.mrb[6].mxu0 }
 0x1e8   : > { %v842_v38 = vpop.f32.mrb[7].mxu0  ;;  %v870_v44 = vmul.f32 %v2141_v36, %v2095_v55 }
 0x1e9   : > { %v869_v53 = vmul.f32 %v842_v38, %v2106_v1  ;;  %v853_v58 = vsel %vm283_vm6, %v842_v38, -inf }
 0x1ea   : > { %875 = vadd.xlane.f32.xlu0 %v874_v39  ;;  %v880_v50 = vsel %vm407_vm4, %v870_v44, 0.0  ;;  %v861_v0 = vsel %vm407_vm4, %v853_v58, -inf  ;;  %v472_v44 = vld [vmem:[#allocation3] sm:$0x1] }
 0x1eb   : > { %872 = vadd.xlane.f32.xlu1 %v871_v41  ;;  %v1432_v43 = vpop.f32.mrb[4].mxu1  ;;  %v877_v60 = vsel %vm407_vm4, %v869_v53, 0.0 }
 0x1ec   : > { %v1051_v46 = vpop.f32.mrb[5].mxu1  ;;  %v1087_v59 = vmul.f32 %v1432_v43, %v2091_v54  ;;  %v1071_v14 = vsel %vm282_vm2, %v1432_v43, -inf }
 0x1ed   : > { %v1070_v9 = vsel %vm281_vm3, %v1051_v46, -inf  ;;  %v1086_v15 = vmul.f32 %v1051_v46, %v2089_v52  ;;  %v1077_v18 = vsel %vm407_vm4, %v1071_v14, -inf }
 0x1ee   : > { %646 = vmax.xlane.f32.xlu0 %v645_v42  ;;  %v1093_v4 = vsel %vm407_vm4, %v1087_v59, 0.0  ;;  %v1074_v16 = vsel %vm407_vm4, %v1070_v9, -inf  ;;  %v854_v42 = vsel %vm284_vm5, %v2141_v36, -inf }
 0x1ef   : > { %643 = vmax.xlane.f32.xlu1 %v642_v45  ;;  %v2154_v49 = vpop.f32.mrb[6].mxu1  ;;  %v1090_v26 = vsel %vm407_vm4, %v1086_v15, 0.0  ;;  %v864_v48 = vsel %vm407_vm4, %v854_v42, -inf }
 0x1f0   : > { %v1061_v51 = vpop.f32.mrb[7].mxu1  ;;  %v1089_v13 = vmul.f32 %v2154_v49, %v2095_v55  ;;  %v1073_v38 = vsel %vm284_vm5, %v2154_v49, -inf }
 0x1f1   : > { %v1072_v25 = vsel %vm283_vm6, %v1061_v51, -inf  ;;  %v1088_v27 = vmul.f32 %v1061_v51, %v2106_v1  ;;  %v1083_v46 = vsel %vm407_vm4, %v1073_v38, -inf }
 0x1f2   : > { %662 = vadd.xlane.f32.xlu0 %v661_v56  ;;  %v1099_v54 = vsel %vm407_vm4, %v1089_v13, 0.0  ;;  %v1080_v35 = vsel %vm407_vm4, %v1072_v25, -inf }
 0x1f3   : > { %881 = vadd.xlane.f32.xlu1 %v880_v50  ;;  %v1096_v37 = vsel %vm407_vm4, %v1088_v27, 0.0 }
 0x1f5   : > { %v413_v62 = vpop.xlane.xlu1 %412 }
 0x1f6   : > { %878 = vadd.xlane.f32.xlu0 %v877_v60  ;;  %v410_v2 = vpop.xlane.xlu0 %409  ;;  %v451_v20 = vrot.slane %v413_v62, %v2171_v10 }
 0x1f7   : > { %862 = vmax.xlane.f32.xlu1 %v861_v0  ;;  %v446_v19 = vrot.slane %v410_v2, %v2166_v5 }
 0x1f9   : > { %v426_v7 = vpop.xlane.xlu1 %425  ;;  %v453_v28 = vsel %vm452_vm8, %v451_v20, %v446_v19  ;;  %v910_v19 = vld [vmem:[#allocation3 + $0x2] sm:$0x1] }
 0x1fa   : > { %1094 = vadd.xlane.f32.xlu0 %v1093_v4  ;;  %v429_v11 = vpop.xlane.xlu0 %428  ;;  %v480_v52 = vrot.slane %v426_v7, %v2166_v5 }
 0x1fb   : > { %659 = vadd.xlane.f32.xlu1 %v658_v8  ;;  %v484_v23 = vrot.slane %v429_v11, %v2171_v10 }
 0x1fd   : > { %v432_v24 = vpop.xlane.xlu1 %431  ;;  %v485_v32 = vsel %vm452_vm8, %v484_v23, %v480_v52 }
 0x1fe   : > { %1075 = vmax.xlane.f32.xlu0 %v1074_v16  ;;  %v419_v21 = vpop.xlane.xlu0 %418  ;;  %v489_v31 = vrot.slane %v432_v24, %v2184_v22 }
 0x1ff   : > { %1078 = vmax.xlane.f32.xlu1 %v1077_v18  ;;  %v465_v29 = vrot.slane %v419_v21, %v2179_v17 }
 0x200   : > { %v490_v40 = vsel %vm459_vm9, %v489_v31, %v485_v32 }
 0x202   : > { %1100 = vadd.xlane.f32.xlu0 %v1099_v54  ;;  %v416_v30 = vpop.xlane.xlu0 %415 }
 0x203   : > { %1091 = vadd.xlane.f32.xlu1 %v1090_v26  ;;  %v458_v33 = vrot.slane %v416_v30, %v2184_v22 }
 0x205   : > { %v460_v1 = vsel %vm459_vm9, %v458_v33, %v453_v28 }
 0x206   : > { %1081 = vmax.xlane.f32.xlu0 %v1080_v35  ;;  %v467_v39 = vsel %vm466_vm10, %v465_v29, %v460_v1  ;;  %v435_v41 = vpop.xlane.xlu0 %434  ;;  %v691_v29 = vld [vmem:[#allocation3 + $0x1] sm:$0x1] }
 0x207   : > { %1097 = vadd.xlane.f32.xlu1 %v1096_v37  ;;  %v469_v43 = vmax.f32 %v436_v34, %v467_v39  ;;  %v494_v45 = vrot.slane %v435_v41, %v2179_v17 }
 0x209   : > { %471 = vst.msk [vmem:[#allocation2] sm:$0x1] %vm470_vm11, %v469_v43  ;;  %v495_v47 = vsel %vm466_vm10, %v494_v45, %v490_v40 }
 0x20a   : > { %1084 = vmax.xlane.f32.xlu0 %v1083_v46  ;;  %v497_v49 = vadd.f32 %v495_v47, %v472_v44 }
 0x20b   : > { %865 = vmax.xlane.f32.xlu1 %v864_v48 }
 0x20c   : > { %498 = vst.msk [vmem:[#allocation3] sm:$0x1] %vm470_vm11, %v497_v49 }
 0x26b   : > { %v641_v50 = vpop.xlane.xlu0 %640 }
 0x26c   : > { %v638_v55 = vpop.xlane.xlu1 %637  ;;  %v676_v59 = vrot.slane %v641_v50, %v2171_v10  ;;  %v1129_v50 = vld [vmem:[#allocation3 + $0x3] sm:$0x1] }
 0x26d   : > { %v672_v60 = vrot.slane %v638_v55, %v2166_v5 }
 0x26f   : > { %v2215_v36 = vpop.xlane.xlu0 %859  ;;  %v677_v0 = vsel %vm452_vm8, %v676_v59, %v672_v60  ;;  %v883_v59 = vld [vmem:[#allocation2 + $0x2] sm:$0x1] }
 0x270   : > { %v2217_v51 = vpop.xlane.xlu1 %856  ;;  %v895_v43 = vrot.slane %v2215_v36, %v2171_v10 }
 0x271   : > { %v891_v44 = vrot.slane %v2217_v51, %v2166_v5 }
 0x273   : > { %v657_v53 = vpop.xlane.xlu0 %656 }
 0x274   : > { %v654_v56 = vpop.xlane.xlu1 %653  ;;  %v703_v20 = vrot.slane %v657_v53, %v2171_v10 }
 0x275   : > { %v699_v21 = vrot.slane %v654_v56, %v2166_v5 }
 0x277   : > { %v876_v57 = vpop.xlane.xlu0 %875  ;;  %v704_v27 = vsel %vm452_vm8, %v703_v20, %v699_v21 }
 0x278   : > { %v873_v58 = vpop.xlane.xlu1 %872  ;;  %v922_v9 = vrot.slane %v876_v57, %v2171_v10  ;;  %v896_v57 = vsel %vm452_vm8, %v895_v43, %v891_v44 }
 0x279   : > { %v918_v11 = vrot.slane %v873_v58, %v2166_v5 }
 0x27b   : > { %v647_v61 = vpop.xlane.xlu0 %646  ;;  %v923_v16 = vsel %vm452_vm8, %v922_v9, %v918_v11 }
 0x27c   : > { %v644_v62 = vpop.xlane.xlu1 %643  ;;  %v686_v2 = vrot.slane %v647_v61, %v2179_v17 }
 0x27d   : > { %v681_v63 = vrot.slane %v644_v62, %v2184_v22 }
 0x27f   : > { %v682_v4 = vsel %vm459_vm9, %v681_v63, %v677_v0  ;;  %v663_v6 = vpop.xlane.xlu0 %662 }
 0x280   : > { %v687_v7 = vsel %vm466_vm10, %v686_v2, %v682_v4  ;;  %v882_v8 = vpop.xlane.xlu1 %881  ;;  %v713_v28 = vrot.slane %v663_v6, %v2179_v17 }
 0x281   : > { %v689_v12 = vmax.f32 %v664_v3, %v687_v7  ;;  %v932_v18 = vrot.slane %v882_v8, %v2179_v17 }
 0x283   : > { %690 = vst.msk [vmem:[#allocation2 + $0x1] sm:$0x1] %vm470_vm11, %v689_v12  ;;  %v879_v13 = vpop.xlane.xlu0 %878 }
 0x284   : > { %v927_v14 = vrot.slane %v879_v13, %v2184_v22  ;;  %v863_v15 = vpop.xlane.xlu1 %862 }
 0x285   : > { %v900_v47 = vrot.slane %v863_v15, %v2184_v22 }
 0x286   : > { %v928_v54 = vsel %vm459_vm9, %v927_v14, %v923_v16 }
 0x287   : > { %v933_v23 = vsel %vm466_vm10, %v932_v18, %v928_v54  ;;  %v1095_v52 = vpop.xlane.xlu0 %1094  ;;  %v901_v61 = vsel %vm459_vm9, %v900_v47, %v896_v57 }
 0x288   : > { %v935_v24 = vadd.f32 %v933_v23, %v910_v19  ;;  %v660_v25 = vpop.xlane.xlu1 %659  ;;  %v1141_v39 = vrot.slane %v1095_v52, %v2171_v10 }
 0x289   : > { %v708_v26 = vrot.slane %v660_v25, %v2184_v22 }
 0x28a   : > { %936 = vst.msk [vmem:[#allocation3 + $0x2] sm:$0x1] %vm470_vm11, %v935_v24 }
 0x28b   : > { %v709_v30 = vsel %vm459_vm9, %v708_v26, %v704_v27  ;;  %v1076_v31 = vpop.xlane.xlu0 %1075 }
 0x28c   : > { %v714_v32 = vsel %vm466_vm10, %v713_v28, %v709_v30  ;;  %v1079_v33 = vpop.xlane.xlu1 %1078  ;;  %v1110_v40 = vrot.slane %v1076_v31, %v2166_v5 }
 0x28d   : > { %v716_v34 = vadd.f32 %v714_v32, %v691_v29  ;;  %v1114_v41 = vrot.slane %v1079_v33, %v2171_v10 }
 0x28f   : > { %717 = vst.msk [vmem:[#allocation3 + $0x1] sm:$0x1] %vm470_vm11, %v716_v34  ;;  %v1101_v35 = vpop.xlane.xlu0 %1100  ;;  %v1115_v56 = vsel %vm452_vm8, %v1114_v41, %v1110_v40 }
 0x290   : > { %v1092_v1 = vpop.xlane.xlu1 %1091  ;;  %v1151_v48 = vrot.slane %v1101_v35, %v2179_v17 }
 0x291   : > { %v1137_v37 = vrot.slane %v1092_v1, %v2166_v5  ;;  %v1102_v5 = vld [vmem:[#allocation2 + $0x3] sm:$0x1] }
 0x293   : > { %v1082_v38 = vpop.xlane.xlu0 %1081  ;;  %v1142_v49 = vsel %vm452_vm8, %v1141_v39, %v1137_v37 }
 0x294   : > { %v1098_v42 = vpop.xlane.xlu1 %1097  ;;  %v1119_v45 = vrot.slane %v1082_v38, %v2184_v22 }
 0x295   : > { %v1146_v46 = vrot.slane %v1098_v42, %v2184_v22 }
 0x296   : > { %v1120_v22 = vsel %vm459_vm9, %v1119_v45, %v1115_v56 }
 0x297   : > { %v1147_v55 = vsel %vm459_vm9, %v1146_v46, %v1142_v49  ;;  %v1085_v53 = vpop.xlane.xlu0 %1084 }
 0x298   : > { %v1152_v10 = vsel %vm466_vm10, %v1151_v48, %v1147_v55  ;;  %v1124_v36 = vrot.slane %v1085_v53, %v2179_v17  ;;  %v866_v51 = vpop.xlane.xlu1 %865 }
 0x299   : > { %v1154_v58 = vadd.f32 %v1152_v10, %v1129_v50  ;;  %v905_v60 = vrot.slane %v866_v51, %v2179_v17 }
 0x29a   : > { %v1125_v62 = vsel %vm466_vm10, %v1124_v36, %v1120_v22 }
 0x29b   : > { %1155 = vst.msk [vmem:[#allocation3 + $0x3] sm:$0x1] %vm470_vm11, %v1154_v58  ;;  %v1127_v63 = vmax.f32 %v1102_v5, %v1125_v62  ;;  %v906_v0 = vsel %vm466_vm10, %v905_v60, %v901_v61 }
 0x29c   : > { %v908_v2 = vmax.f32 %v883_v59, %v906_v0 }
 0x29d   : > { %1128 = vst.msk [vmem:[#allocation2 + $0x3] sm:$0x1] %vm470_vm11, %v1127_v63 }
 0x29e   : > { %909 = vst.msk [vmem:[#allocation2 + $0x2] sm:$0x1] %vm470_vm11, %v908_v2 }
 0x2a2   : > { %v1160_v3 = vld [vmem:[#allocation3] sm:$0xf] }
 0x2a3   : > { %v1161_v4 = vmul.f32 0.03125, %v1160_v3 }
 0x2a5   : > { %v1159_v17 = vld [vmem:[#allocation2] sm:$0xf] }
 0x2a6   : > { %v1162_v6 = vsub.f32 %v1159_v17, %v1161_v4 }
 0x2a8   : > { %1164 = vst.msk [vmem:[%s263_s6] sm:$0xf] %vm269_vm7, %v1162_v6 }
 0x2a9   : > { %1700 = shalt.err (!%p1697_p5)
}
 0x2aa   : > { %s1701_s2 = scalar_lea.hbm %s2274_s27, 64  ;;  %s1705_s25 = scalar_lea.hbm %s2327_s3, 128 }
 0x2ab   : > { %p1702_p11 = scmp.ne.s32.totalorder %s2274_s27, %s1701_s2  ;;  %p1706_p10 = scmp.lt.u32.totalorder %s2274_s27, %s2327_s3 }
 0x2ac   : > { %p1707_p9 = scmp.lt.u32.totalorder %s1705_s25, %s1701_s2  ;;  %p1709_p3 = scmp.lt.u32.totalorder %s1701_s2, %s2274_s27 }
 0x2ad   : > { %p1703_p1 = pnand %p1702_p11, %p2353_p7 }
 0x2ae   : > { %p1708_p0 = por %p1707_p9, %p1706_p10 }
 0x2af   : > { %p1704_p12 = pneg %p1703_p1 }
 0x2b0   : > { %p1710_p8 = por %p1709_p3, %p1708_p0 }
 0x2b2   : > { %p1711_p13 = pnand %p1710_p8, %p1704_p12 }
 0x2b4   : > { %1714 = shalt.err (!%p1711_p13)
}
 0x2b5   : > { %1492 = dma.vmem_to_hbm [thread:$0]  (%p2353_p7), %s2276_s21, 64, %s2274_s27, %s1166_s5  }
 0x2b6 PF: > { %s1191_s22 = sand.u32 1, %s1757_s12   ;;  %p2354_p2 = scmp.ne.s32.totalorder %s2338_s24, 0 }
 0x2b7   : > { %p2355_p6 = scmp.ge.s32.totalorder %s1777_s17, 2  ;;  %s1192_s26 = scalar_lea.sflag [#allocation6], %s1191_s22 }
 0x2b9   : > { %p1506_p4 = pnand %p2355_p6, %p2354_p2 }
 0x2bb   : > { %1752 = dma.done.wait (!%p1506_p4), %s1192_s26, 64  }
 0x2bc   : > { %1754 = vsyncadd (!%p1506_p4), %s1192_s26, 4294967232  ;;  %s22_s17 = sadd.s32 1, %s1777_s17   ;;  %s2356_s12 = smov %s1761_s13 }
 0x2bd   : > { %p19_p5 = scmp.ge.s32.totalorder %s22_s17, 4   ;;  %s2357_s13 = smov %s1765_s14 }
 0x2be   : > { %s2358_s14 = smov %s1934_s19  ;;  %s2359_s15 = smov %s1773_s16 }
 0x2bf   : > { %s2360_s16 = smov %s2362_s30  ;;  %21 = sbr.rel (!%p19_p5) target bundleno = 11 (0xb), region = 103 }
 0x2c6   :  { %1197 = vsyncpa [#allocation5], 1 }
 0x2c7   :  { %1199 = vsyncpa [#allocation5 + $0x1], 1 }
 0x2c8   :  { %1200 = vsyncpa [#allocation8], 1 }
 0x2c9   :  { %1202 = vsyncpa [#allocation8 + $0x1], 1 }
 0x2ca   :  { %1203 = vsyncpa [#allocation6], 1 }
 0x2cb   :  { %1205 = vsyncpa [#allocation6 + $0x1], 1 }

</bundles_post_ra>
